<compile_context>
chip_gen: v6e
topology: v6e:2x2x1
jax: 0.10.0
libtpu: 0.0.40
codegen_flags: <defaults>
</compile_context>

<pallas_src>
import functools

import jax
import jax.numpy as jnp
from jax.experimental import pallas as pl
from jax.experimental.pallas import tpu as pltpu

LANE = 128
SUBLANE = 8


def _round_up(a, b):
    return ((a + b - 1) // b) * b


def _head_mlp_kernel(x_ref, w1_ref, b1_ref, w2_ref, b2_ref, o_ref):
    # x_ref : (TB, F)      bf16
    # w1_ref: (F, H_pad)   bf16   (cols H..H_pad-1 are zero)
    # b1_ref: (1, H_pad)   f32    (cols H..H_pad-1 are zero)
    # w2_ref: (H_pad, O)   bf16   (rows H..H_pad-1 are zero)
    # b2_ref: (1, O)       f32
    # o_ref : (TB, O)      f32    (unpadded output -> no write amplification)
    h = jnp.dot(x_ref[...], w1_ref[...], preferred_element_type=jnp.float32)
    h = jnp.maximum(h + b1_ref[...], 0.0)                 # f32 bias + ReLU (VPU)
    y = jnp.dot(h.astype(w2_ref.dtype), w2_ref[...],      # bf16 only at MXU boundary
                preferred_element_type=jnp.float32)
    o_ref[...] = (y + b2_ref[...]).astype(o_ref.dtype)    # f32 bias add, then store


def prepare_head_params(w1, b1, w2, b2, *, compute_dtype=jnp.bfloat16):
    """One-time weight prep (call when weights change, NOT every forward).

    w1: [F, H], b1: [H], w2: [H, O], b2: [O]  (x @ W convention == x @ W_pt.T).
    Returns padded/cast params consumed by `head_forward`.
    """
    F, H = w1.shape
    O = w2.shape[1]
    H_pad = _round_up(max(H, LANE), LANE)   # lane-dense hidden dim; exact-zero padding

    w1_p = jnp.zeros((F, H_pad), jnp.float32).at[:, :H].set(w1.astype(jnp.float32))
    w2_p = jnp.zeros((H_pad, O), jnp.float32).at[:H, :].set(w2.astype(jnp.float32))
    b1_p = jnp.zeros((1, H_pad), jnp.float32).at[0, :H].set(b1.astype(jnp.float32))
    b2_p = jnp.reshape(b2.astype(jnp.float32), (1, O))

    return {
        "w1": w1_p.astype(compute_dtype),
        "b1": b1_p,                         # stays f32
        "w2": w2_p.astype(compute_dtype),
        "b2": b2_p,                         # stays f32
        "F": F, "H": H, "H_pad": H_pad, "O": O,
        "compute_dtype": compute_dtype,
    }


def head_forward(x, params, *, batch_tile=None):
    """Fused 2-layer MLP head: relu(x @ w1 + b1) @ w2 + b2.

    x: [B, F] float32 (or bf16).  Returns [B, O] float32.
    """
    B, F = x.shape
    assert F == params["F"], "feature dim mismatch"
    H_pad = params["H_pad"]
    O = params["O"]
    compute_dtype = params["compute_dtype"]

    # Batch padding / tiling.  Tiny B -> single grid step (overhead bound);
    # B >= 512 -> at least 2 steps so both v7x TensorCores get work; big B ->
    # 1024-row tiles (per-tile VMEM is tiny; amortizes per-step overhead).
    B_min = _round_up(B, SUBLANE)
    if batch_tile is None:
        if B_min < 512:
            batch_tile = B_min
        elif B_min <= 2048:
            batch_tile = _round_up((B_min + 1) // 2, SUBLANE)
        else:
            batch_tile = 1024
    B_pad = _round_up(B_min, batch_tile)

    x_p = x.astype(compute_dtype)
    if B_pad != B:
        x_p = jnp.pad(x_p, ((0, B_pad - B), (0, 0)))

    grid = (B_pad // batch_tile,)

    flops = 2 * B_pad * (F * H_pad + H_pad * O)
    bytes_accessed = (
        x_p.size * x_p.dtype.itemsize
        + params["w1"].size * params["w1"].dtype.itemsize
        + params["w2"].size * params["w2"].dtype.itemsize
        + params["b1"].size * 4 + params["b2"].size * 4
        + B_pad * O * 4
    )

    out_pad = pl.pallas_call(
        _head_mlp_kernel,
        out_shape=jax.ShapeDtypeStruct((B_pad, O), jnp.float32),
        grid_spec=pltpu.PrefetchScalarGridSpec(
            num_scalar_prefetch=0,
            grid=grid,
            in_specs=[
                pl.BlockSpec((batch_tile, F), lambda i: (i, 0)),   # x tile
                pl.BlockSpec((F, H_pad), lambda i: (0, 0)),        # W1 (bf16)
                pl.BlockSpec((1, H_pad), lambda i: (0, 0)),        # b1 (f32)
                pl.BlockSpec((H_pad, O), lambda i: (0, 0)),        # W2 (bf16)
                pl.BlockSpec((1, O), lambda i: (0, 0)),            # b2 (f32)
            ],
            out_specs=pl.BlockSpec((batch_tile, O), lambda i: (i, 0)),
        ),
        compiler_params=pltpu.CompilerParams(
            dimension_semantics=("parallel",),
        ),
        cost_estimate=pl.CostEstimate(
            flops=flops, transcendentals=0, bytes_accessed=bytes_accessed),
    )(x_p, params["w1"], params["b1"], params["w2"], params["b2"])

    return out_pad if B_pad == B else out_pad[:B]


def init_linear_params(key, fan_in, fan_out, dtype=jnp.float32):
    """PyTorch nn.Linear default init: U(-1/sqrt(fan_in), 1/sqrt(fan_in))."""
    kw, kb = jax.random.split(key)
    bound = 1.0 / jnp.sqrt(jnp.asarray(fan_in, dtype))
    # stored as [in, out] so the kernel computes x @ W (== x @ W_pt.T)
    w = jax.random.uniform(kw, (fan_in, fan_out), dtype, minval=-bound, maxval=bound)
    b = jax.random.uniform(kb, (fan_out,), dtype, minval=-bound, maxval=bound)
    return w, b


if __name__ == "__main__":
    # Shapes consistent with the module: n_head_layer=2, hidden_dim=32,
    # feature_input_dim=16, output_dim=8, batch=8.
    batch = 8
    feature_input_dim = 16
    hidden_dim = 32
    output_dim = 8

    key = jax.random.PRNGKey(0)
    kx, k1, k2 = jax.random.split(key, 3)

    x = jax.random.normal(kx, (batch, feature_input_dim), jnp.float32)
    w1, b1 = init_linear_params(k1, feature_input_dim, hidden_dim)
    w2, b2 = init_linear_params(k2, hidden_dim, output_dim)

    # Weight prep is a one-time step (hoisted out of the per-call path).
    params = prepare_head_params(w1, b1, w2, b2)

    out = head_forward(x, params)
    out = jax.block_until_ready(out)
    assert out.shape == (batch, output_dim)

    # Reference 1: exact PyTorch semantics in f32 (loose tol: bf16 matmul operands).
    ref_f32 = jnp.maximum(x @ w1 + b1[None, :], 0.0) @ w2 + b2[None, :]
    assert jnp.allclose(out, ref_f32, atol=3e-2, rtol=3e-2), "mismatch vs f32 reference"

    # Reference 2: bf16-matched reference (same casts as the kernel), tight tol.
    bf16 = jnp.bfloat16
    h_ref = jnp.dot(x.astype(bf16), w1.astype(bf16),
                    preferred_element_type=jnp.float32) + b1[None, :]
    h_ref = jnp.maximum(h_ref, 0.0)
    ref_bf = jnp.dot(h_ref.astype(bf16), w2.astype(bf16),
                     preferred_element_type=jnp.float32) + b2[None, :]
    assert jnp.allclose(out, ref_bf, atol=2e-3, rtol=2e-3), "mismatch vs bf16-matched reference"

    print("KERNEL_OK")
</pallas_src>

<mosaic_0001>
module attributes {stable_mosaic.version = 11 : i64} {
  func.func @_head_mlp_kernel(%arg0: i32, %arg1: memref<8x16xbf16, #tpu.memory_space<vmem>>, %arg2: memref<16x128xbf16, #tpu.memory_space<vmem>>, %arg3: memref<1x128xf32, #tpu.memory_space<vmem>>, %arg4: memref<128x8xbf16, #tpu.memory_space<vmem>>, %arg5: memref<1x8xf32, #tpu.memory_space<vmem>>, %arg6: memref<8x8xf32, #tpu.memory_space<vmem>>) attributes {dimension_semantics = [#tpu.dimension_semantics<parallel>], iteration_bounds = array<i64: 1>, scalar_prefetch = 0 : i64, scratch_operands = 0 : i64, tpu.core_type = #tpu.core_type<tc>, window_params = [{transform_indices = @transform_0, window_bounds = array<i64: 8, 16>}, {pipeline_mode = #tpu.pipeline_mode<synchronous>, transform_indices = @transform_1, window_bounds = array<i64: 16, 128>}, {pipeline_mode = #tpu.pipeline_mode<synchronous>, transform_indices = @transform_2, window_bounds = array<i64: 1, 128>}, {pipeline_mode = #tpu.pipeline_mode<synchronous>, transform_indices = @transform_3, window_bounds = array<i64: 128, 8>}, {pipeline_mode = #tpu.pipeline_mode<synchronous>, transform_indices = @transform_4, window_bounds = array<i64: 1, 8>}, {transform_indices = @transform_5, window_bounds = array<i64: 8, 8>}]} {
    %c0 = arith.constant 0 : index
    %c0_0 = arith.constant 0 : index
    %0 = vector.load %arg1[%c0, %c0_0] : memref<8x16xbf16, #tpu.memory_space<vmem>>, vector<8x16xbf16>
    %c0_1 = arith.constant 0 : index
    %c0_2 = arith.constant 0 : index
    %1 = vector.load %arg2[%c0_1, %c0_2] : memref<16x128xbf16, #tpu.memory_space<vmem>>, vector<16x128xbf16>
    %cst = arith.constant dense<0.000000e+00> : vector<8x128xf32>
    %2 = tpu.matmul %0, %1, %cst {dimension_numbers = #tpu.dot_dimension_numbers<[1], [0], [0], [1], [0, 0, 1, 1], [], []>} : vector<8x16xbf16>, vector<16x128xbf16>, vector<8x128xf32> -> vector<8x128xf32>
    %c0_3 = arith.constant 0 : index
    %c0_4 = arith.constant 0 : index
    %3 = vector.load %arg3[%c0_3, %c0_4] : memref<1x128xf32, #tpu.memory_space<vmem>>, vector<1x128xf32>
    %4 = vector.broadcast %3 : vector<1x128xf32> to vector<8x128xf32>
    %5 = arith.addf %2, %4 : vector<8x128xf32>
    %cst_5 = arith.constant 0.000000e+00 : f32
    %6 = vector.broadcast %cst_5 : f32 to vector<8x128xf32>
    %7 = arith.maximumf %5, %6 : vector<8x128xf32>
    %8 = arith.truncf %7 : vector<8x128xf32> to vector<8x128xbf16>
    %c0_6 = arith.constant 0 : index
    %c0_7 = arith.constant 0 : index
    %9 = vector.load %arg4[%c0_6, %c0_7] : memref<128x8xbf16, #tpu.memory_space<vmem>>, vector<128x8xbf16>
    %cst_8 = arith.constant dense<0.000000e+00> : vector<8x8xf32>
    %10 = tpu.matmul %8, %9, %cst_8 {dimension_numbers = #tpu.dot_dimension_numbers<[1], [0], [0], [1], [0, 0, 1, 1], [], []>} : vector<8x128xbf16>, vector<128x8xbf16>, vector<8x8xf32> -> vector<8x8xf32>
    %c0_9 = arith.constant 0 : index
    %c0_10 = arith.constant 0 : index
    %11 = vector.load %arg5[%c0_9, %c0_10] : memref<1x8xf32, #tpu.memory_space<vmem>>, vector<1x8xf32>
    %12 = vector.broadcast %11 : vector<1x8xf32> to vector<8x8xf32>
    %13 = arith.addf %10, %12 : vector<8x8xf32>
    %c0_11 = arith.constant 0 : index
    %c0_12 = arith.constant 0 : index
    %14 = vector.load %arg6[%c0_11, %c0_12] : memref<8x8xf32, #tpu.memory_space<vmem>>, vector<8x8xf32>
    tpu.vector_store %arg6[%c0_11, %c0_12], %13 {strides = array<i32>} : memref<8x8xf32, #tpu.memory_space<vmem>>, vector<8x8xf32>,
    return
  }
  func.func @transform_0(%arg0: i32) -> (i32, i32) {
    %c0_i32 = arith.constant 0 : i32
    %c0_i32_0 = arith.constant 0 : i32
    return %arg0, %c0_i32 : i32, i32
  }
  func.func @transform_1(%arg0: i32) -> (i32, i32) {
    %c0_i32 = arith.constant 0 : i32
    %c0_i32_0 = arith.constant 0 : i32
    %c0_i32_1 = arith.constant 0 : i32
    return %c0_i32, %c0_i32_0 : i32, i32
  }
  func.func @transform_2(%arg0: i32) -> (i32, i32) {
    %c0_i32 = arith.constant 0 : i32
    %c0_i32_0 = arith.constant 0 : i32
    %c0_i32_1 = arith.constant 0 : i32
    return %c0_i32, %c0_i32_0 : i32, i32
  }
  func.func @transform_3(%arg0: i32) -> (i32, i32) {
    %c0_i32 = arith.constant 0 : i32
    %c0_i32_0 = arith.constant 0 : i32
    %c0_i32_1 = arith.constant 0 : i32
    return %c0_i32, %c0_i32_0 : i32, i32
  }
  func.func @transform_4(%arg0: i32) -> (i32, i32) {
    %c0_i32 = arith.constant 0 : i32
    %c0_i32_0 = arith.constant 0 : i32
    %c0_i32_1 = arith.constant 0 : i32
    return %c0_i32, %c0_i32_0 : i32, i32
  }
  func.func @transform_5(%arg0: i32) -> (i32, i32) {
    %c0_i32 = arith.constant 0 : i32
    %c0_i32_0 = arith.constant 0 : i32
    return %arg0, %c0_i32 : i32, i32
  }
}

</mosaic_0001>

<bundles_post_ra>
// kernel: tpu_custom_call.1
= control target key start
LH: loop header
LB: loop body
LE: loop exit
PB: predicated region body
PF: predicated region fallthrough
CT: control target
= control target key end

     0   :  { %v294_v1 = vmov 0.0   ;;  %vm295_vm0 = vmmov 0   ;;  %vm38_vm1 = vcmask 130048   ;;  %s366_s0 = inlined_call_operand.vmem [shape: bf16[8,16], index: 0, kind: input, shape index: {}]   ;;  %s367_s1 = inlined_call_operand.vmem [shape: bf16[16,128], index: 1, kind: input, shape index: {}]   ;;  %s368_s2 = inlined_call_operand.vmem [shape: f32[1,128], index: 2, kind: input, shape index: {}]   ;;  %s369_s3 = inlined_call_operand.vmem [shape: bf16[128,8], index: 3, kind: input, shape index: {}]   ;;  %s370_s4 = inlined_call_operand.vmem [shape: f32[1,8], index: 4, kind: input, shape index: {}]   ;;  %s371_s5 = inlined_call_operand.hbm [shape: f32[8,8], index: 5, kind: output, shape index: {}]  }
   0x1   :  { %v263_v0 = vld [vmem:[%s367_s1] sm:$0xff]   ;;  %234 = vmatprep.subr.bf16.mxu0 %v294_v1  ;;  %240 = vmatprep.subr.bf16.mxu1 %v294_v1  ;;  %v264_v3 = vld [vmem:[%s369_s3 + $0x38] sm:$0xff]   ;;  %v265_v4 = vld [vmem:[%s369_s3 + $0x30] sm:$0xff]  }
   0x2   :  { %v22_v2 = vld [vmem:[%s366_s0] sm:$0xf]  ;;  %235 = vmatpush3.bf16.msra.mxu0 %v263_v0  ;;  %236 = vmatprep.mubr.msk.bf16.mxu0 %vm295_vm0, %v294_v1  ;;  %v266_v5 = vld [vmem:[%s369_s3 + $0x28] sm:$0xff]  }
   0x3   :  { %256 = vmatprep.mubr.msk.bf16.mxu1 %vm295_vm0, %v294_v1  ;;  %241 = vmatpush3.bf16.msra.mxu1 %v264_v3 }
   0x4   :  { %242 = vmatprep.subr.bf16.mxu1 %v294_v1 }
   0x5   :  { %237 = vmatmul.mubr.msk.bf16.vlgmr.msra.gmra.mxu0 %vm38_vm1, %v22_v2 }
   0x7   :  { %243 = vmatpush3.bf16.msra.mxu1 %v265_v4 }
   0x8   :  { %244 = vmatprep.subr.bf16.mxu1 %v294_v1 }
   0x9   :  { %10 = vsyncpa [#allocation3], 0  ;;  %v267_v6 = vld [vmem:[%s369_s3 + $0x20] sm:$0xff]   ;;  %v268_v7 = vld [vmem:[%s369_s3 + $0x18] sm:$0xff]   ;;  %s296_s15 = smov [#allocation2]   ;;  %vm195_vm2 = vcmask 64512  }
   0xa   :  { %v269_v8 = vld [vmem:[%s369_s3 + $0x10] sm:$0xff]   ;;  %v270_v9 = vld [vmem:[%s369_s3 + $0x8] sm:$0xff]   ;;  %v271_v10 = vld [vmem:[%s369_s3] sm:$0xff]   ;;  %s203_s16 = sshll.u32 %s296_s15, 4  ;;  %s204_s16 = int_to_ptr.vmem [resolvable:$true] %s203_s16 }
   0xb   :  { %245 = vmatpush3.bf16.msra.mxu1 %v266_v5  ;;  %v211_v11 = vld [vmem:[%s368_s2] ss:$0 sm:$0xff]  ;;  %s272_s2 = scalar_lea.vmem %s204_s16, 128  ;;  %p277_p1 = scmp.lt.s32.totalorder %s204_s16, %s204_s16 }
   0xc   :  { %246 = vmatprep.subr.bf16.mxu1 %v294_v1  ;;  %v214_v19 = vld [vmem:[%s370_s4] ss:$0 sm:$0xff]  ;;  %p273_p0 = scmp.ne.s32.totalorder %s204_s16, %s272_s2  ;;  %p278_p2 = scmp.lt.s32.totalorder %s272_s2, %s272_s2 }
   0xe   :  { %p279_p3 = por %p278_p2, %p277_p1 }
   0xf   :  { %247 = vmatpush3.bf16.msra.mxu1 %v267_v6 }
  0x10   :  { %248 = vmatprep.subr.bf16.mxu1 %v294_v1  ;;  %p280_p4 = pnand %p279_p3, %p273_p0 }
  0x13   :  { %249 = vmatpush3.bf16.msra.mxu1 %v268_v7 }
  0x14   :  { %250 = vmatprep.subr.bf16.mxu1 %v294_v1 }
  0x17   :  { %251 = vmatpush3.bf16.msra.mxu1 %v269_v8 }
  0x18   :  { %252 = vmatprep.subr.bf16.mxu1 %v294_v1 }
  0x1b   :  { %253 = vmatpush3.bf16.msra.mxu1 %v270_v9 }
  0x1c   :  { %254 = vmatprep.subr.bf16.mxu1 %v294_v1 }
  0x1f   :  { %255 = vmatpush3.bf16.msra.mxu1 %v271_v10 }
  0xc5   :  { %v76_v12 = vpop.f32.mrf.mxu0 }
  0xc6   :  { %v77_v13 = vadd.f32 %v211_v11, %v76_v12 }
  0xc7   :  { %v238_v14 = vpop.f32.mrf.mxu0 }
  0xc8   :  { %v82_v15 = vmax.f32 %v77_v13, 0.0 }
  0xc9   :  { %v79_v16 = vpop.f32.mrf.mxu0 }
  0xca   :  { %v83_v17 = vpack.c.bf16 %v82_v15, %v82_v15 }
  0xcb   :  { %v239_v18 = vpop.f32.mrf.mxu0 }
  0xcc   :  { %257 = vmatmul.mubr.bf16.vlgmr.msra.gmra.mxu1 %v83_v17 }
 0x18c   :  { %v189_v20 = vpop.f32.mrf.mxu1 }
 0x18d   :  { %v190_v21 = vadd.f32 %v214_v19, %v189_v20 }
 0x18e   :  { %v258_v22 = vpop.f32.mrf.mxu1 }
 0x18f   :  { %196 = vst.msk [vmem:[#allocation2] sm:$0xff] %vm195_vm2, %v190_v21 }
 0x190   :  { %v192_v23 = vpop.f32.mrf.mxu1 }
 0x191   :  { %283 = shalt.err (!%p280_p4)
}
 0x192   :  { %206 = dma.vmem_to_hbm [thread:$0]  %s204_s16, 128, %s371_s5, [#allocation3]   ;;  %v259_v24 = vpop.f32.mrf.mxu1 }
 0x193   :  { %292 = dma.done.wait [#allocation3], 128  }
 0x194   :  { %293 = vsyncadd [#allocation3], 4294967168 }
 0x195   :  { %210 = vsyncpa [#allocation3], 1 }

</bundles_post_ra>
